<compile_context>
chip_gen: v5e
topology: v5e:2x2
jax: 0.10.0
libtpu: 0.0.40
codegen_flags: <defaults>
</compile_context>

<pallas_src>
import functools

import jax
import jax.numpy as jnp
from jax.experimental import pallas as pl
from jax.experimental.pallas import tpu as pltpu

LANE = 128        # lane width: pad every feature dim to a multiple of this
SUBLANE = 8       # sublane width: pad the batch tile to a multiple of this
MAX_TILE_B = 128  # largest batch tile (matches MXU row count)


def _round_up(n, m):
    return ((n + m - 1) // m) * m


def _pad2(a, rows, cols):
    """Zero-pad a 2-D array up to (rows, cols)."""
    return jnp.pad(a, ((0, rows - a.shape[0]), (0, cols - a.shape[1])))


def _qnet_kernel(x_ref, w1_ref, b1_ref, w2_ref, b2_ref,
                 w3_ref, b3_ref, w4_ref, b4_ref, out_ref):
    """Fused 4-layer MLP (3 ReLUs) on one (TILE_B, feat) batch tile.

    Weights arrive as bf16 [in_pad, out_pad]; biases as f32 [1, out_pad].
    MXU runs bf16 x bf16 -> f32; bias add + ReLU stay f32 on the VPU.
    """
    h = x_ref[...]  # (TILE_B, IN_PAD) f32

    h = jnp.dot(h.astype(jnp.bfloat16), w1_ref[...],
                preferred_element_type=jnp.float32) + b1_ref[...]
    h = jnp.maximum(h, 0.0)

    h = jnp.dot(h.astype(jnp.bfloat16), w2_ref[...],
                preferred_element_type=jnp.float32) + b2_ref[...]
    h = jnp.maximum(h, 0.0)

    h = jnp.dot(h.astype(jnp.bfloat16), w3_ref[...],
                preferred_element_type=jnp.float32) + b3_ref[...]
    h = jnp.maximum(h, 0.0)

    out = jnp.dot(h.astype(jnp.bfloat16), w4_ref[...],
                  preferred_element_type=jnp.float32) + b4_ref[...]
    out_ref[...] = out.astype(out_ref.dtype)


@functools.partial(jax.jit, static_argnames=("tile_b",))
def _forward_impl(x, params, *, tile_b):
    """x: [B, input_size] f32. params: dict name -> (W[in,out] bf16, b[1,out] f32)."""
    w1, b1 = params["l1"]
    w2, b2 = params["l2"]
    w3, b3 = params["l3"]
    w4, b4 = params["l4"]

    B, in_size = x.shape
    out_size = w4.shape[1]

    # Lane-dense padded dims.
    in_p = _round_up(in_size, LANE)
    h1_p = _round_up(w1.shape[1], LANE)
    h2_p = _round_up(w2.shape[1], LANE)
    h3_p = _round_up(w3.shape[1], LANE)
    out_p = _round_up(out_size, LANE)
    b_p = _round_up(B, tile_b)

    # Zero-pad operands (exact: padded rows/cols contribute 0 to every dot).
    x_p = _pad2(x.astype(jnp.float32), b_p, in_p)
    w1_p, b1_p = _pad2(w1, in_p, h1_p), _pad2(b1, 1, h1_p)
    w2_p, b2_p = _pad2(w2, h1_p, h2_p), _pad2(b2, 1, h2_p)
    w3_p, b3_p = _pad2(w3, h2_p, h3_p), _pad2(b3, 1, h3_p)
    w4_p, b4_p = _pad2(w4, h3_p, out_p), _pad2(b4, 1, out_p)

    grid = (pl.cdiv(b_p, tile_b),)

    # Weights/biases: constant index_map -> loaded once, VMEM-resident.
    def const(a):
        return pl.BlockSpec(a.shape, lambda i: (0, 0))

    out = pl.pallas_call(
        _qnet_kernel,
        out_shape=jax.ShapeDtypeStruct((b_p, out_p), jnp.float32),
        grid=grid,
        in_specs=[
            pl.BlockSpec((tile_b, in_p), lambda i: (i, 0)),   # x: tiled on batch
            const(w1_p), const(b1_p),
            const(w2_p), const(b2_p),
            const(w3_p), const(b3_p),
            const(w4_p), const(b4_p),
        ],
        out_specs=pl.BlockSpec((tile_b, out_p), lambda i: (i, 0)),
        compiler_params=pltpu.CompilerParams(
            dimension_semantics=("parallel",)),
    )(x_p, w1_p, b1_p, w2_p, b2_p, w3_p, b3_p, w4_p, b4_p)

    return out[:B, :out_size]


def linear_qnet_forward(x, params):
    """Forward pass matching Linear_QNet.forward. Accepts [B, in] or [in]."""
    squeeze = x.ndim == 1
    if squeeze:
        x = x[None, :]
    # Adaptive batch tile: multiple of 8 sublanes, capped at 128 MXU rows.
    tile_b = min(MAX_TILE_B, _round_up(x.shape[0], SUBLANE))
    out = _forward_impl(x, params, tile_b=tile_b)
    return out[0] if squeeze else out


def init_params(key, input_size, h1, h2, h3, output_size):
    """Init mimicking PyTorch nn.Linear default:
    U(-1/sqrt(fan_in), 1/sqrt(fan_in)) for both W and b.
    Weights stored as bf16 [in, out] (transposed vs PyTorch's [out, in]);
    biases stored as f32 [1, out]."""
    params = {}
    dims = [(input_size, h1), (h1, h2), (h2, h3), (h3, output_size)]
    names = ["l1", "l2", "l3", "l4"]
    for name, (fan_in, fan_out) in zip(names, dims):
        key, kw, kb = jax.random.split(key, 3)
        bound = 1.0 / jnp.sqrt(jnp.float32(fan_in))
        w = jax.random.uniform(kw, (fan_in, fan_out), jnp.float32, -bound, bound)
        b = jax.random.uniform(kb, (1, fan_out), jnp.float32, -bound, bound)
        params[name] = (w.astype(jnp.bfloat16), b)
    return params


def reference_forward(x, params):
    """Pure-JAX reference using the same bf16-operand / f32-accumulate math."""
    h = x.astype(jnp.float32)
    for name in ["l1", "l2", "l3"]:
        w, b = params[name]
        h = jnp.dot(h.astype(jnp.bfloat16), w,
                    preferred_element_type=jnp.float32) + b
        h = jnp.maximum(h, 0.0)
    w, b = params["l4"]
    return jnp.dot(h.astype(jnp.bfloat16), w,
                   preferred_element_type=jnp.float32) + b


if __name__ == "__main__":
    key = jax.random.PRNGKey(0)

    # Small shapes consistent with the module's __init__ signature.
    batch = 8
    input_size, h1, h2, h3, output_size = 16, 32, 64, 32, 4

    key, kx = jax.random.split(key)
    x = jax.random.normal(kx, (batch, input_size), jnp.float32)

    params = init_params(key, input_size, h1, h2, h3, output_size)

    out = linear_qnet_forward(x, params)
    out = jax.block_until_ready(out)

    ref = reference_forward(x, params)
    assert out.shape == (batch, output_size)
    assert jnp.allclose(out, ref, atol=1e-2, rtol=1e-2), "mismatch vs JAX reference"

    # Also exercise the single-state (1-D) path that a DQN agent uses at act().
    single = linear_qnet_forward(x[0], params)
    single = jax.block_until_ready(single)
    assert single.shape == (output_size,)
    assert jnp.allclose(single, ref[0], atol=1e-2, rtol=1e-2)

    print("KERNEL_OK")
</pallas_src>

<mosaic_0001>
module attributes {stable_mosaic.version = 11 : i64} {
  func.func @_qnet_kernel(%arg0: i32, %arg1: memref<8x128xf32, #tpu.memory_space<vmem>>, %arg2: memref<128x128xbf16, #tpu.memory_space<vmem>>, %arg3: memref<1x128xf32, #tpu.memory_space<vmem>>, %arg4: memref<128x128xbf16, #tpu.memory_space<vmem>>, %arg5: memref<1x128xf32, #tpu.memory_space<vmem>>, %arg6: memref<128x128xbf16, #tpu.memory_space<vmem>>, %arg7: memref<1x128xf32, #tpu.memory_space<vmem>>, %arg8: memref<128x128xbf16, #tpu.memory_space<vmem>>, %arg9: memref<1x128xf32, #tpu.memory_space<vmem>>, %arg10: memref<8x128xf32, #tpu.memory_space<vmem>>) attributes {dimension_semantics = [#tpu.dimension_semantics<parallel>], iteration_bounds = array<i64: 1>, scalar_prefetch = 0 : i64, scratch_operands = 0 : i64, tpu.core_type = #tpu.core_type<tc>, window_params = [{transform_indices = @transform_0, window_bounds = array<i64: 8, 128>}, {pipeline_mode = #tpu.pipeline_mode<synchronous>, transform_indices = @transform_1, window_bounds = array<i64: 128, 128>}, {pipeline_mode = #tpu.pipeline_mode<synchronous>, transform_indices = @transform_2, window_bounds = array<i64: 1, 128>}, {pipeline_mode = #tpu.pipeline_mode<synchronous>, transform_indices = @transform_3, window_bounds = array<i64: 128, 128>}, {pipeline_mode = #tpu.pipeline_mode<synchronous>, transform_indices = @transform_4, window_bounds = array<i64: 1, 128>}, {pipeline_mode = #tpu.pipeline_mode<synchronous>, transform_indices = @transform_5, window_bounds = array<i64: 128, 128>}, {pipeline_mode = #tpu.pipeline_mode<synchronous>, transform_indices = @transform_6, window_bounds = array<i64: 1, 128>}, {pipeline_mode = #tpu.pipeline_mode<synchronous>, transform_indices = @transform_7, window_bounds = array<i64: 128, 128>}, {pipeline_mode = #tpu.pipeline_mode<synchronous>, transform_indices = @transform_8, window_bounds = array<i64: 1, 128>}, {transform_indices = @transform_9, window_bounds = array<i64: 8, 128>}]} {
    %c0 = arith.constant 0 : index
    %c0_0 = arith.constant 0 : index
    %0 = vector.load %arg1[%c0, %c0_0] : memref<8x128xf32, #tpu.memory_space<vmem>>, vector<8x128xf32>
    %1 = arith.truncf %0 : vector<8x128xf32> to vector<8x128xbf16>
    %c0_1 = arith.constant 0 : index
    %c0_2 = arith.constant 0 : index
    %2 = vector.load %arg2[%c0_1, %c0_2] : memref<128x128xbf16, #tpu.memory_space<vmem>>, vector<128x128xbf16>
    %cst = arith.constant dense<0.000000e+00> : vector<8x128xf32>
    %3 = tpu.matmul %1, %2, %cst {dimension_numbers = #tpu.dot_dimension_numbers<[1], [0], [0], [1], [0, 0, 1, 1], [], []>} : vector<8x128xbf16>, vector<128x128xbf16>, vector<8x128xf32> -> vector<8x128xf32>
    %c0_3 = arith.constant 0 : index
    %c0_4 = arith.constant 0 : index
    %4 = vector.load %arg3[%c0_3, %c0_4] : memref<1x128xf32, #tpu.memory_space<vmem>>, vector<1x128xf32>
    %5 = vector.broadcast %4 : vector<1x128xf32> to vector<8x128xf32>
    %6 = arith.addf %3, %5 : vector<8x128xf32>
    %cst_5 = arith.constant 0.000000e+00 : f32
    %7 = vector.broadcast %cst_5 : f32 to vector<8x128xf32>
    %8 = arith.maximumf %6, %7 : vector<8x128xf32>
    %9 = arith.truncf %8 : vector<8x128xf32> to vector<8x128xbf16>
    %c0_6 = arith.constant 0 : index
    %c0_7 = arith.constant 0 : index
    %10 = vector.load %arg4[%c0_6, %c0_7] : memref<128x128xbf16, #tpu.memory_space<vmem>>, vector<128x128xbf16>
    %cst_8 = arith.constant dense<0.000000e+00> : vector<8x128xf32>
    %11 = tpu.matmul %9, %10, %cst_8 {dimension_numbers = #tpu.dot_dimension_numbers<[1], [0], [0], [1], [0, 0, 1, 1], [], []>} : vector<8x128xbf16>, vector<128x128xbf16>, vector<8x128xf32> -> vector<8x128xf32>
    %c0_9 = arith.constant 0 : index
    %c0_10 = arith.constant 0 : index
    %12 = vector.load %arg5[%c0_9, %c0_10] : memref<1x128xf32, #tpu.memory_space<vmem>>, vector<1x128xf32>
    %13 = vector.broadcast %12 : vector<1x128xf32> to vector<8x128xf32>
    %14 = arith.addf %11, %13 : vector<8x128xf32>
    %cst_11 = arith.constant 0.000000e+00 : f32
    %15 = vector.broadcast %cst_11 : f32 to vector<8x128xf32>
    %16 = arith.maximumf %14, %15 : vector<8x128xf32>
    %17 = arith.truncf %16 : vector<8x128xf32> to vector<8x128xbf16>
    %c0_12 = arith.constant 0 : index
    %c0_13 = arith.constant 0 : index
    %18 = vector.load %arg6[%c0_12, %c0_13] : memref<128x128xbf16, #tpu.memory_space<vmem>>, vector<128x128xbf16>
    %cst_14 = arith.constant dense<0.000000e+00> : vector<8x128xf32>
    %19 = tpu.matmul %17, %18, %cst_14 {dimension_numbers = #tpu.dot_dimension_numbers<[1], [0], [0], [1], [0, 0, 1, 1], [], []>} : vector<8x128xbf16>, vector<128x128xbf16>, vector<8x128xf32> -> vector<8x128xf32>
    %c0_15 = arith.constant 0 : index
    %c0_16 = arith.constant 0 : index
    %20 = vector.load %arg7[%c0_15, %c0_16] : memref<1x128xf32, #tpu.memory_space<vmem>>, vector<1x128xf32>
    %21 = vector.broadcast %20 : vector<1x128xf32> to vector<8x128xf32>
    %22 = arith.addf %19, %21 : vector<8x128xf32>
    %cst_17 = arith.constant 0.000000e+00 : f32
    %23 = vector.broadcast %cst_17 : f32 to vector<8x128xf32>
    %24 = arith.maximumf %22, %23 : vector<8x128xf32>
    %25 = arith.truncf %24 : vector<8x128xf32> to vector<8x128xbf16>
    %c0_18 = arith.constant 0 : index
    %c0_19 = arith.constant 0 : index
    %26 = vector.load %arg8[%c0_18, %c0_19] : memref<128x128xbf16, #tpu.memory_space<vmem>>, vector<128x128xbf16>
    %cst_20 = arith.constant dense<0.000000e+00> : vector<8x128xf32>
    %27 = tpu.matmul %25, %26, %cst_20 {dimension_numbers = #tpu.dot_dimension_numbers<[1], [0], [0], [1], [0, 0, 1, 1], [], []>} : vector<8x128xbf16>, vector<128x128xbf16>, vector<8x128xf32> -> vector<8x128xf32>
    %c0_21 = arith.constant 0 : index
    %c0_22 = arith.constant 0 : index
    %28 = vector.load %arg9[%c0_21, %c0_22] : memref<1x128xf32, #tpu.memory_space<vmem>>, vector<1x128xf32>
    %29 = vector.broadcast %28 : vector<1x128xf32> to vector<8x128xf32>
    %30 = arith.addf %27, %29 : vector<8x128xf32>
    %c0_23 = arith.constant 0 : index
    %c0_24 = arith.constant 0 : index
    %31 = vector.load %arg10[%c0_23, %c0_24] : memref<8x128xf32, #tpu.memory_space<vmem>>, vector<8x128xf32>
    tpu.vector_store %arg10[%c0_23, %c0_24], %30 {strides = array<i32>} : memref<8x128xf32, #tpu.memory_space<vmem>>, vector<8x128xf32>,
    return
  }
  func.func @transform_0(%arg0: i32) -> (i32, i32) {
    %c0_i32 = arith.constant 0 : i32
    %c0_i32_0 = arith.constant 0 : i32
    return %arg0, %c0_i32 : i32, i32
  }
  func.func @transform_1(%arg0: i32) -> (i32, i32) {
    %c0_i32 = arith.constant 0 : i32
    %c0_i32_0 = arith.constant 0 : i32
    %c0_i32_1 = arith.constant 0 : i32
    return %c0_i32, %c0_i32_0 : i32, i32
  }
  func.func @transform_2(%arg0: i32) -> (i32, i32) {
    %c0_i32 = arith.constant 0 : i32
    %c0_i32_0 = arith.constant 0 : i32
    %c0_i32_1 = arith.constant 0 : i32
    return %c0_i32, %c0_i32_0 : i32, i32
  }
  func.func @transform_3(%arg0: i32) -> (i32, i32) {
    %c0_i32 = arith.constant 0 : i32
    %c0_i32_0 = arith.constant 0 : i32
    %c0_i32_1 = arith.constant 0 : i32
    return %c0_i32, %c0_i32_0 : i32, i32
  }
  func.func @transform_4(%arg0: i32) -> (i32, i32) {
    %c0_i32 = arith.constant 0 : i32
    %c0_i32_0 = arith.constant 0 : i32
    %c0_i32_1 = arith.constant 0 : i32
    return %c0_i32, %c0_i32_0 : i32, i32
  }
  func.func @transform_5(%arg0: i32) -> (i32, i32) {
    %c0_i32 = arith.constant 0 : i32
    %c0_i32_0 = arith.constant 0 : i32
    %c0_i32_1 = arith.constant 0 : i32
    return %c0_i32, %c0_i32_0 : i32, i32
  }
  func.func @transform_6(%arg0: i32) -> (i32, i32) {
    %c0_i32 = arith.constant 0 : i32
    %c0_i32_0 = arith.constant 0 : i32
    %c0_i32_1 = arith.constant 0 : i32
    return %c0_i32, %c0_i32_0 : i32, i32
  }
  func.func @transform_7(%arg0: i32) -> (i32, i32) {
    %c0_i32 = arith.constant 0 : i32
    %c0_i32_0 = arith.constant 0 : i32
    %c0_i32_1 = arith.constant 0 : i32
    return %c0_i32, %c0_i32_0 : i32, i32
  }
  func.func @transform_8(%arg0: i32) -> (i32, i32) {
    %c0_i32 = arith.constant 0 : i32
    %c0_i32_0 = arith.constant 0 : i32
    %c0_i32_1 = arith.constant 0 : i32
    return %c0_i32, %c0_i32_0 : i32, i32
  }
  func.func @transform_9(%arg0: i32) -> (i32, i32) {
    %c0_i32 = arith.constant 0 : i32
    %c0_i32_0 = arith.constant 0 : i32
    return %arg0, %c0_i32 : i32, i32
  }
}

</mosaic_0001>

<bundles_post_ra>
// kernel: _forward_impl.1
= control target key start
LH: loop header
LB: loop body
LE: loop exit
PB: predicated region body
PF: predicated region fallthrough
CT: control target
= control target key end

     0   :  { %s697_s1 = inlined_call_operand.vmem [shape: bf16[128,128], index: 1, kind: input, shape index: {}]   ;;  %s698_s3 = inlined_call_operand.vmem [shape: bf16[128,128], index: 3, kind: input, shape index: {}]   ;;  %s699_s2 = inlined_call_operand.vmem [shape: f32[1,128], index: 2, kind: input, shape index: {}]   ;;  %s700_s0 = inlined_call_operand.vmem [shape: f32[8,128], index: 0, kind: input, shape index: {}]   ;;  %s701_s4 = inlined_call_operand.vmem [shape: f32[1,128], index: 4, kind: input, shape index: {}]   ;;  %s702_s5 = inlined_call_operand.vmem [shape: bf16[128,128], index: 5, kind: input, shape index: {}]   ;;  %s703_s6 = inlined_call_operand.vmem [shape: f32[1,128], index: 6, kind: input, shape index: {}]   ;;  %s704_s7 = inlined_call_operand.vmem [shape: bf16[128,128], index: 7, kind: input, shape index: {}]   ;;  %s705_s8 = inlined_call_operand.vmem [shape: f32[1,128], index: 8, kind: input, shape index: {}]   ;;  %s706_s9 = inlined_call_operand.vmem [shape: f32[8,128], index: 9, kind: output, shape index: {}]  }
   0x1   :  { %v504_v0 = vld [vmem:[%s697_s1 + $0x38] sm:$0xff]  ;;  %v503_v1 = vld [vmem:[%s697_s1 + $0x30] sm:$0xff]  ;;  %v502_v4 = vld [vmem:[%s697_s1 + $0x28] sm:$0xff] }
   0x2   :  { %102 = vmatpush.bf16.msra.mxu0 %v504_v0  ;;  %v512_v2 = vld [vmem:[%s698_s3 + $0x38] sm:$0xff]  ;;  %v511_v3 = vld [vmem:[%s698_s3 + $0x30] sm:$0xff]  ;;  %v510_v5 = vld [vmem:[%s698_s3 + $0x28] sm:$0xff] }
   0x3   :  { %185 = vmatpush.bf16.msra.mxu1 %v512_v2  ;;  %v501_v6 = vld [vmem:[%s697_s1 + $0x20] sm:$0xff]  ;;  %v500_v8 = vld [vmem:[%s697_s1 + $0x18] sm:$0xff]  ;;  %v499_v10 = vld [vmem:[%s697_s1 + $0x10] sm:$0xff] }
   0x4   :  { %v509_v7 = vld [vmem:[%s698_s3 + $0x20] sm:$0xff]  ;;  %v508_v9 = vld [vmem:[%s698_s3 + $0x18] sm:$0xff]  ;;  %v507_v11 = vld [vmem:[%s698_s3 + $0x10] sm:$0xff] }
   0x5   :  { %v498_v12 = vld [vmem:[%s697_s1 + $0x8] sm:$0xff]  ;;  %v497_v13 = vld [vmem:[%s697_s1] sm:$0xff]  ;;  %v520_v18 = vld [vmem:[%s702_s5 + $0x38] sm:$0xff] }
   0x6   :  { %103 = vmatpush.bf16.msra.mxu0 %v503_v1  ;;  %v32_v14 = vld [vmem:[%s700_s0] sm:$0xff]  ;;  %v506_v16 = vld [vmem:[%s698_s3 + $0x8] sm:$0xff]  ;;  %268 = vmatpush.bf16.msra.mxu2 %v520_v18  ;;  %v519_v19 = vld [vmem:[%s702_s5 + $0x30] sm:$0xff] }
   0x7   :  { %186 = vmatpush.bf16.msra.mxu1 %v511_v3  ;;  %v33_v15 = vpack.c.bf16 %v32_v14, %v32_v14  ;;  %v505_v17 = vld [vmem:[%s698_s3] sm:$0xff]  ;;  %v518_v20 = vld [vmem:[%s702_s5 + $0x28] sm:$0xff]  ;;  %v516_v22 = vld [vmem:[%s702_s5 + $0x18] sm:$0xff] }
   0x8   :  { %v517_v21 = vld [vmem:[%s702_s5 + $0x20] sm:$0xff]  ;;  %v515_v23 = vld [vmem:[%s702_s5 + $0x10] sm:$0xff]  ;;  %v514_v30 = vld [vmem:[%s702_s5 + $0x8] sm:$0xff] }
   0x9   :  { %v529_v24 = vld [vmem:[%s699_s2] ss:$0 sm:$0xff]  ;;  %v528_v32 = vld [vmem:[%s704_s7 + $0x38] sm:$0xff]  ;;  %v527_v33 = vld [vmem:[%s704_s7 + $0x30] sm:$0xff] }
   0xa   :  { %104 = vmatpush.bf16.msra.mxu0 %v502_v4  ;;  %269 = vmatpush.bf16.msra.mxu2 %v519_v19  ;;  %v513_v31 = vld [vmem:[%s702_s5] sm:$0xff]  ;;  %v526_v34 = vld [vmem:[%s704_s7 + $0x28] sm:$0xff]  ;;  %v524_v36 = vld [vmem:[%s704_s7 + $0x18] sm:$0xff] }
   0xb   :  { %187 = vmatpush.bf16.msra.mxu1 %v510_v5  ;;  %351 = vmatpush.bf16.msra.mxu3 %v528_v32  ;;  %v525_v35 = vld [vmem:[%s704_s7 + $0x20] sm:$0xff]  ;;  %v523_v37 = vld [vmem:[%s704_s7 + $0x10] sm:$0xff]  ;;  %v522_v44 = vld [vmem:[%s704_s7 + $0x8] sm:$0xff] }
   0xc   :  { %v530_v38 = vld [vmem:[%s701_s4] ss:$0 sm:$0xff] }
   0xd   :  { %v521_v45 = vld [vmem:[%s704_s7] sm:$0xff] }
   0xe   :  { %105 = vmatpush.bf16.msra.mxu0 %v501_v6  ;;  %270 = vmatpush.bf16.msra.mxu2 %v518_v20  ;;  %v531_v46 = vld [vmem:[%s703_s6] ss:$0 sm:$0xff] }
   0xf   :  { %188 = vmatpush.bf16.msra.mxu1 %v509_v7  ;;  %352 = vmatpush.bf16.msra.mxu3 %v527_v33  ;;  %v532_v52 = vld [vmem:[%s705_s8] ss:$0 sm:$0xff] }
  0x12   :  { %106 = vmatpush.bf16.msra.mxu0 %v500_v8  ;;  %271 = vmatpush.bf16.msra.mxu2 %v517_v21 }
  0x13   :  { %189 = vmatpush.bf16.msra.mxu1 %v508_v9  ;;  %353 = vmatpush.bf16.msra.mxu3 %v526_v34 }
  0x16   :  { %107 = vmatpush.bf16.msra.mxu0 %v499_v10  ;;  %272 = vmatpush.bf16.msra.mxu2 %v516_v22 }
  0x17   :  { %190 = vmatpush.bf16.msra.mxu1 %v507_v11  ;;  %354 = vmatpush.bf16.msra.mxu3 %v525_v35 }
  0x1a   :  { %108 = vmatpush.bf16.msra.mxu0 %v498_v12  ;;  %273 = vmatpush.bf16.msra.mxu2 %v515_v23 }
  0x1b   :  { %191 = vmatpush.bf16.msra.mxu1 %v506_v16  ;;  %355 = vmatpush.bf16.msra.mxu3 %v524_v36 }
  0x1e   :  { %109 = vmatpush.bf16.msra.mxu0 %v497_v13  ;;  %274 = vmatpush.bf16.msra.mxu2 %v514_v30 }
  0x1f   :  { %192 = vmatpush.bf16.msra.mxu1 %v505_v17  ;;  %356 = vmatpush.bf16.msra.mxu3 %v523_v37 }
  0x21   :  { %110 = vmatmul.bf16.vlgmr.msra.gmra.mxu0 %v33_v15 }
  0x22   :  { %275 = vmatpush.bf16.msra.mxu2 %v513_v31 }
  0x23   :  { %357 = vmatpush.bf16.msra.mxu3 %v522_v44 }
  0x27   :  { %358 = vmatpush.bf16.msra.mxu3 %v521_v45 }
  0x9e   :  { %v111_v25 = vpop.f32.mrf.mxu0 }
  0x9f   :  { %v112_v26 = vadd.f32 %v529_v24, %v111_v25 }
  0xa1   :  { %v115_v27 = vmax.f32 %v112_v26, 0.0 }
  0xa3   :  { %v116_v28 = vpack.c.bf16 %v115_v27, %v115_v27 }
  0xa5   :  { %193 = vmatmul.bf16.vlgmr.msra.gmra.mxu1 %v116_v28 }
  0xa6   :  { %v113_v29 = vpop.f32.mrf.mxu0 }
 0x122   :  { %v194_v39 = vpop.f32.mrf.mxu1 }
 0x123   :  { %v195_v40 = vadd.f32 %v530_v38, %v194_v39 }
 0x125   :  { %v198_v41 = vmax.f32 %v195_v40, 0.0 }
 0x127   :  { %v199_v42 = vpack.c.bf16 %v198_v41, %v198_v41 }
 0x129   :  { %276 = vmatmul.bf16.vlgmr.msra.gmra.mxu2 %v199_v42 }
 0x12a   :  { %v196_v43 = vpop.f32.mrf.mxu1 }
 0x1ac   :  { %v277_v47 = vpop.f32.mrf.mxu2 }
 0x1ad   :  { %v278_v48 = vadd.f32 %v531_v46, %v277_v47 }
 0x1af   :  { %v281_v49 = vmax.f32 %v278_v48, 0.0 }
 0x1b1   :  { %v282_v50 = vpack.c.bf16 %v281_v49, %v281_v49 }
 0x1b3   :  { %359 = vmatmul.bf16.vlgmr.msra.gmra.mxu3 %v282_v50 }
 0x1b4   :  { %v279_v51 = vpop.f32.mrf.mxu2 }
 0x236   :  { %v360_v53 = vpop.f32.mrf.mxu3 }
 0x237   :  { %v361_v54 = vadd.f32 %v532_v52, %v360_v53 }
 0x239   :  { %364 = vst [vmem:[%s706_s9] sm:$0xff] %v361_v54 }
 0x23e   :  { %v362_v55 = vpop.f32.mrf.mxu3 }

</bundles_post_ra>
